<compile_context>
chip_gen: v6e
topology: v6e:2x2x1
jax: 0.10.0
libtpu: 0.0.40
codegen_flags: <defaults>
</compile_context>

<pallas_src>
import jax
import jax.numpy as jnp
from jax.experimental import pallas as pl
from jax.experimental.pallas import tpu as pltpu


def _round_up(a: int, b: int) -> int:
    return (a + b - 1) // b * b


def _key_linear_single_k_kernel(x_ref, w_ref, b_ref, o_ref):
    """Whole reduction in one tile: dot + bias straight to the output tile."""
    o_ref[...] = (
        jnp.dot(x_ref[...], w_ref[...], preferred_element_type=jnp.float32)
        + b_ref[0, :]
    ).astype(o_ref.dtype)


def _key_linear_acc_kernel(x_ref, w_ref, b_ref, o_ref, acc_ref):
    """Tiled reduction: K is the innermost ('arbitrary') grid axis."""
    k = pl.program_id(2)

    @pl.when(k == 0)
    def _():
        acc_ref[...] = jnp.zeros_like(acc_ref)

    acc_ref[...] += jnp.dot(
        x_ref[...], w_ref[...], preferred_element_type=jnp.float32
    )

    @pl.when(k == pl.num_programs(2) - 1)
    def _():
        # bias is a (tn,) row; broadcast in the add (no explicit (tm, tn) temp).
        o_ref[...] = (acc_ref[...] + b_ref[0, :]).astype(o_ref.dtype)


def key_layer_forward(x, weight, bias, *, tm=None, tn=None, tk=None,
                      compute_dtype=None, out_dtype=None):
    """KeyLayer.forward:  y = x @ weight + bias.

    x:      (batch, seq, d_model)
    weight: (d_model, d_out)   with d_out = d_model * n_heads
    bias:   (d_out,)
    returns (batch, seq, d_out)
    """
    B, S, K = x.shape
    d_out = weight.shape[1]
    M = B * S

    compute_dtype = jnp.dtype(compute_dtype or x.dtype)   # pass jnp.bfloat16 for MXU peak
    out_dtype = jnp.dtype(out_dtype or x.dtype)

    # ---- tile selection: MXU-sized tiles, clamped to the (padded) problem ----
    # sublane packing: f32 -> 8, bf16 -> 16, int8/fp8 -> 32
    min_itemsize = min(compute_dtype.itemsize, out_dtype.itemsize)
    sub = 8 * (4 // min_itemsize)
    if tm is None:
        tm = 256 if M >= 256 else _round_up(M, sub)
    if tn is None:
        tn = 256 if d_out >= 256 else _round_up(d_out, 128)
    if tk is None:
        # keep K un-tiled when it comfortably fits VMEM; otherwise tile the reduction
        tk = K if K <= 2048 else 512

    # ---- zero-pad to tile multiples (exact result; sliced back below) ----
    Mp, Np, Kp = _round_up(M, tm), _round_up(d_out, tn), _round_up(K, tk)

    x2d = x.reshape(M, K).astype(compute_dtype)
    w2d = weight.astype(compute_dtype)
    b2d = bias.reshape(1, d_out).astype(jnp.float32)

    if Mp != M or Kp != K:
        x2d = jnp.pad(x2d, ((0, Mp - M), (0, Kp - K)))
    if Kp != K or Np != d_out:
        w2d = jnp.pad(w2d, ((0, Kp - K), (0, Np - d_out)))
    if Np != d_out:
        b2d = jnp.pad(b2d, ((0, 0), (0, Np - d_out)))

    grid_k = Kp // tk
    single_k = grid_k == 1

    # ---- VMEM budget: double-buffered in/out tiles (+ f32 acc scratch if tiled K) ----
    in_b = compute_dtype.itemsize
    out_b = out_dtype.itemsize
    footprint = 2 * (tm * tk * in_b + tk * tn * in_b + tn * 4 + tm * tn * out_b)
    if not single_k:
        footprint += tm * tn * 4
    # cap at 64 MiB so the same config is safe on v7x (64 MiB physical VMEM)
    vmem_limit = int(min(64 * 1024 * 1024,
                         max(32 * 1024 * 1024, footprint * 3 // 2 + (4 << 20))))

    cost = pl.CostEstimate(
        flops=2 * M * K * d_out,
        transcendentals=0,
        bytes_accessed=(M * K * in_b                        # activations, once
                        + (Mp // tm) * K * d_out * in_b     # weight, re-streamed per i-block
                        + d_out * 4                         # bias
                        + M * d_out * out_b),               # output
    )

    if single_k:
        # -------- fast path: whole reduction fits in one tile, 2-D grid, no scratch --
        grid = (Mp // tm, Np // tn)
        out2d = pl.pallas_call(
            _key_linear_single_k_kernel,
            out_shape=jax.ShapeDtypeStruct((Mp, Np), out_dtype),
            grid_spec=pltpu.PrefetchScalarGridSpec(
                num_scalar_prefetch=0,
                grid=grid,
                in_specs=[
                    pl.BlockSpec((tm, Kp), lambda i, j: (i, 0)),
                    pl.BlockSpec((Kp, tn), lambda i, j: (0, j)),
                    pl.BlockSpec((1, tn), lambda i, j: (0, j)),
                ],
                out_specs=pl.BlockSpec((tm, tn), lambda i, j: (i, j)),
            ),
            compiler_params=pltpu.CompilerParams(
                dimension_semantics=("parallel", "parallel"),
                vmem_limit_bytes=vmem_limit,
            ),
            cost_estimate=cost,
        )(x2d, w2d, b2d)
    else:
        # -------- general path: tiled reduction with f32 VMEM accumulator -----------
        grid = (Mp // tm, Np // tn, grid_k)
        out2d = pl.pallas_call(
            _key_linear_acc_kernel,
            out_shape=jax.ShapeDtypeStruct((Mp, Np), out_dtype),
            grid_spec=pltpu.PrefetchScalarGridSpec(
                num_scalar_prefetch=0,
                grid=grid,
                in_specs=[
                    pl.BlockSpec((tm, tk), lambda i, j, k: (i, k)),
                    pl.BlockSpec((tk, tn), lambda i, j, k: (k, j)),
                    pl.BlockSpec((1, tn), lambda i, j, k: (0, j)),
                ],
                out_specs=pl.BlockSpec((tm, tn), lambda i, j, k: (i, j)),
                scratch_shapes=[pltpu.VMEM((tm, tn), jnp.float32)],
            ),
            compiler_params=pltpu.CompilerParams(
                dimension_semantics=("parallel", "parallel", "arbitrary"),
                vmem_limit_bytes=vmem_limit,
            ),
            cost_estimate=cost,
        )(x2d, w2d, b2d)

    return out2d[:M, :d_out].reshape(B, S, d_out)


if __name__ == "__main__":
    key = jax.random.PRNGKey(0)

    # ---- Test 1: small shapes consistent with KeyLayer(d_model=32, n_heads=4) ----
    batch, seq, d_model, n_heads = 2, 8, 32, 4
    d_out = d_model * n_heads
    kx, kw, kb, key = jax.random.split(key, 4)

    x = jax.random.normal(kx, (batch, seq, d_model), dtype=jnp.float32)
    bound = 1.0 / (d_model ** 0.5)  # mimic nn.Linear's uniform(-1/sqrt(in), 1/sqrt(in))
    weight = jax.random.uniform(kw, (d_model, d_out), jnp.float32, -bound, bound)
    bias = jax.random.uniform(kb, (d_out,), jnp.float32, -bound, bound)

    out = key_layer_forward(x, weight, bias)
    jax.block_until_ready(out)

    ref = x @ weight + bias
    assert out.shape == (batch, seq, d_out)
    assert jnp.allclose(out, ref, atol=1e-5, rtol=1e-5)

    # ---- Test 2: shapes NOT divisible by the tiles (exercises the padding path) ----
    b2_, s2_, dm2, nh2 = 2, 5, 48, 3       # M = 10, K = 48, d_out = 144
    do2 = dm2 * nh2
    kx2, kw2, kb2, key = jax.random.split(key, 4)
    x2 = jax.random.normal(kx2, (b2_, s2_, dm2), dtype=jnp.float32)
    bnd2 = 1.0 / (dm2 ** 0.5)
    w2 = jax.random.uniform(kw2, (dm2, do2), jnp.float32, -bnd2, bnd2)
    bb2 = jax.random.uniform(kb2, (do2,), jnp.float32, -bnd2, bnd2)

    out2 = key_layer_forward(x2, w2, bb2)
    jax.block_until_ready(out2)
    ref2 = x2 @ w2 + bb2
    assert out2.shape == (b2_, s2_, do2)
    assert jnp.allclose(out2, ref2, atol=1e-4, rtol=1e-4)

    # ---- Test 3: force the tiled-K (accumulator) path with a small tk override ----
    out3 = key_layer_forward(x, weight, bias, tk=16)
    jax.block_until_ready(out3)
    assert jnp.allclose(out3, ref, atol=1e-5, rtol=1e-5)

    print("KERNEL_OK")
</pallas_src>

<mosaic_0001>
module attributes {stable_mosaic.version = 11 : i64} {
  func.func @_key_linear_single_k_kernel(%arg0: i32, %arg1: i32, %arg2: memref<16x32xf32, #tpu.memory_space<vmem>>, %arg3: memref<32x128xf32, #tpu.memory_space<vmem>>, %arg4: memref<1x128xf32, #tpu.memory_space<vmem>>, %arg5: memref<16x128xf32, #tpu.memory_space<vmem>>) attributes {dimension_semantics = [#tpu.dimension_semantics<parallel>, #tpu.dimension_semantics<parallel>], iteration_bounds = array<i64: 1, 1>, scalar_prefetch = 0 : i64, scratch_operands = 0 : i64, tpu.core_type = #tpu.core_type<tc>, window_params = [{transform_indices = @transform_0, window_bounds = array<i64: 16, 32>}, {transform_indices = @transform_1, window_bounds = array<i64: 32, 128>}, {transform_indices = @transform_2, window_bounds = array<i64: 1, 128>}, {transform_indices = @transform_3, window_bounds = array<i64: 16, 128>}]} {
    %c0 = arith.constant 0 : index
    %c0_0 = arith.constant 0 : index
    %0 = vector.load %arg2[%c0, %c0_0] : memref<16x32xf32, #tpu.memory_space<vmem>>, vector<16x32xf32>
    %c0_1 = arith.constant 0 : index
    %c0_2 = arith.constant 0 : index
    %1 = vector.load %arg3[%c0_1, %c0_2] : memref<32x128xf32, #tpu.memory_space<vmem>>, vector<32x128xf32>
    %cst = arith.constant dense<0.000000e+00> : vector<16x128xf32>
    %2 = tpu.matmul %0, %1, %cst {dimension_numbers = #tpu.dot_dimension_numbers<[1], [0], [0], [1], [0, 0, 1, 1], [], []>} : vector<16x32xf32>, vector<32x128xf32>, vector<16x128xf32> -> vector<16x128xf32>
    %c0_3 = arith.constant 0 : index
    %c0_4 = arith.constant 0 : index
    %3 = vector.load %arg4[%c0_3, %c0_4] : memref<1x128xf32, #tpu.memory_space<vmem>>, vector<1x128xf32>
    %4 = vector.shape_cast %3 : vector<1x128xf32> to vector<128xf32>
    %5 = vector.shape_cast %4 : vector<128xf32> to vector<1x128xf32>
    %6 = vector.broadcast %5 : vector<1x128xf32> to vector<16x128xf32>
    %7 = arith.addf %2, %6 : vector<16x128xf32>
    %c0_5 = arith.constant 0 : index
    %c0_6 = arith.constant 0 : index
    %8 = vector.load %arg5[%c0_5, %c0_6] : memref<16x128xf32, #tpu.memory_space<vmem>>, vector<16x128xf32>
    tpu.vector_store %arg5[%c0_5, %c0_6], %7 {strides = array<i32>} : memref<16x128xf32, #tpu.memory_space<vmem>>, vector<16x128xf32>,
    return
  }
  func.func @transform_0(%arg0: i32, %arg1: i32) -> (i32, i32) {
    %c0_i32 = arith.constant 0 : i32
    %c0_i32_0 = arith.constant 0 : i32
    return %arg0, %c0_i32 : i32, i32
  }
  func.func @transform_1(%arg0: i32, %arg1: i32) -> (i32, i32) {
    %c0_i32 = arith.constant 0 : i32
    %c0_i32_0 = arith.constant 0 : i32
    return %c0_i32, %arg1 : i32, i32
  }
  func.func @transform_2(%arg0: i32, %arg1: i32) -> (i32, i32) {
    %c0_i32 = arith.constant 0 : i32
    %c0_i32_0 = arith.constant 0 : i32
    return %c0_i32, %arg1 : i32, i32
  }
  func.func @transform_3(%arg0: i32, %arg1: i32) -> (i32, i32) {
    %c0_i32 = arith.constant 0 : i32
    return %arg0, %arg1 : i32, i32
  }
}

</mosaic_0001>

<bundles_post_ra>
// kernel: tpu_custom_call.1
= control target key start
LH: loop header
LB: loop body
LE: loop exit
PB: predicated region body
PF: predicated region fallthrough
CT: control target
= control target key end

     0   :  { %8 = vsyncpa [#allocation3], 0  ;;  %s297_s0 = inlined_call_operand.hbm [shape: f32[16,32], index: 0, kind: input, shape index: {}]   ;;  %s298_s1 = inlined_call_operand.hbm [shape: f32[32,128], index: 1, kind: input, shape index: {}]   ;;  %s299_s2 = inlined_call_operand.vmem [shape: f32[1,128], index: 2, kind: input, shape index: {}]   ;;  %s300_s3 = inlined_call_operand.hbm [shape: f32[16,128], index: 3, kind: output, shape index: {}]  }
   0x1   :  { %9 = vsyncpa [#allocation6], 0 }
   0x2   :  { %10 = vsyncpa [#allocation4], 0  ;;  %s249_s12 = smov [#allocation2]  }
   0x3   :  { %s16_s13 = sshll.u32 %s249_s12, 4  ;;  %s17_s13 = int_to_ptr.vmem [resolvable:$true] %s16_s13 }
   0x4   :  { %s191_s14 = scalar_lea.vmem %s17_s13, 256  ;;  %p196_p1 = scmp.lt.s32.totalorder %s17_s13, %s17_s13 }
   0x5   :  { %p192_p0 = scmp.ne.s32.totalorder %s17_s13, %s191_s14  ;;  %p197_p2 = scmp.lt.s32.totalorder %s191_s14, %s191_s14 }
   0x7   :  { %p198_p3 = por %p197_p2, %p196_p1 }
   0x9   :  { %p199_p4 = pnand %p198_p3, %p192_p0 }
   0xb   :  { %202 = shalt.err (!%p199_p4)
}
   0xc   :  { %s250_s15 = smov 128   ;;  %s251_s16 = smov 8  }
   0xd   :  { %22 = dma.hbm_to_vmem [thread:$0]  %s297_s0, 256, %s17_s13, [#allocation3], %s250_s15, %s250_s15, %s251_s16  }
   0xe   :  { %s252_s19 = smov [#allocation5]  }
   0xf   :  { %s28_s20 = sshll.u32 %s252_s19, 4  ;;  %s29_s20 = int_to_ptr.vmem [resolvable:$true] %s28_s20 }
  0x10   :  { %s211_s21 = scalar_lea.vmem %s29_s20, 512  ;;  %p216_p6 = scmp.lt.s32.totalorder %s29_s20, %s29_s20 }
  0x11   :  { %p212_p5 = scmp.ne.s32.totalorder %s29_s20, %s211_s21  ;;  %p217_p7 = scmp.lt.s32.totalorder %s211_s21, %s211_s21 }
  0x13   :  { %p218_p8 = por %p217_p7, %p216_p6 }
  0x15   :  { %p219_p9 = pnand %p218_p8, %p212_p5 }
  0x17   :  { %222 = shalt.err (!%p219_p9)
}
  0x18   :  { %34 = dma.hbm_to_vmem [thread:$0]  %s298_s1, 512, %s29_s20, [#allocation6], %s250_s15, %s250_s15, %s251_s16  }
  0x19   :  { %243 = dma.done.wait [#allocation3], 256  }
  0x1a   :  { %244 = vsyncadd [#allocation3], 4294967040 }
  0x1b   :  { %245 = dma.done.wait [#allocation6], 512  }
  0x1c   :  { %246 = vsyncadd [#allocation6], 4294966784  ;;  %vm56_vm0 = vcmask 261120   ;;  %v48_v0 = vld [vmem:[#allocation5 + $0x18] sm:$0xff]  ;;  %v47_v1 = vld [vmem:[#allocation5 + $0x10] sm:$0xff]  ;;  %s253_s24 = smov [#allocation7]  }
  0x1d   :  { %167 = vmatprep.subr.mxu0 %v48_v0  ;;  %v43_v2 = vld [vmem:[#allocation2] sm:$0xff]  ;;  %v46_v3 = vld [vmem:[#allocation5 + $0x8] sm:$0xff]  ;;  %v45_v4 = vld [vmem:[#allocation5] sm:$0xff]  ;;  %s145_s25 = sshll.u32 %s253_s24, 4  ;;  %s146_s25 = int_to_ptr.vmem [resolvable:$true] %s145_s25 }
  0x1e   :  { %168 = vmatpush3.msra.mxu0 %v48_v0  ;;  %175 = vmatprep.mubr.msk.f32.mxu0 %vm56_vm0, %v43_v2  ;;  %v44_v5 = vld [vmem:[#allocation2 + $0x8] sm:$0xff]  ;;  %v158_v6 = vld [vmem:[%s299_s2] ss:$0 sm:$0xff]  ;;  %s223_s26 = scalar_lea.vmem %s146_s25, 256  ;;  %p228_p11 = scmp.lt.s32.totalorder %s146_s25, %s146_s25 }
  0x1f   :  { %169 = vmatprep.subr.mxu0 %v47_v1  ;;  %p224_p10 = scmp.ne.s32.totalorder %s146_s25, %s223_s26  ;;  %p229_p12 = scmp.lt.s32.totalorder %s223_s26, %s223_s26 }
  0x20   :  { %170 = vmatpush3.msra.mxu0 %v47_v1 }
  0x21   :  { %171 = vmatprep.subr.mxu0 %v46_v3  ;;  %p230_p13 = por %p229_p12, %p228_p11 }
  0x22   :  { %172 = vmatpush3.msra.mxu0 %v46_v3 }
  0x23   :  { %173 = vmatprep.subr.mxu0 %v45_v4  ;;  %p231_p0 = pnand %p230_p13, %p224_p10 }
  0x24   :  { %174 = vmatpush3.msra.mxu0 %v45_v4 }
  0x25   :  { %176 = vmatmul.mubr.msk.f32.vlgmr.msra.gmra.mxu0 %vm56_vm0, %v44_v5 }
  0xe5   :  { %v177_v7 = vpop.f32.mrf.mxu0 }
  0xe6   :  { %v135_v8 = vadd.f32 %v177_v7, %v158_v6 }
  0xe7   :  { %v129_v9 = vpop.f32.mrf.mxu0 }
  0xe8   :  { %139 = vst [vmem:[#allocation7 + $0x8] sm:$0xff] %v135_v8  ;;  %v130_v10 = vadd.f32 %v158_v6, %v129_v9 }
  0xea   :  { %138 = vst [vmem:[#allocation7] sm:$0xff] %v130_v10 }
  0xeb   :  { %234 = shalt.err (!%p231_p0)
}
  0xec   :  { %151 = dma.vmem_to_hbm [thread:$0]  %s146_s25, 256, %s300_s3, [#allocation4], %s250_s15, %s250_s15, %s251_s16  }
  0xed   :  { %247 = dma.done.wait [#allocation4], 256  }
  0xee   :  { %248 = vsyncadd [#allocation4], 4294967040 }
  0xef   :  { %155 = vsyncpa [#allocation3], 1 }
  0xf0   :  { %156 = vsyncpa [#allocation6], 1 }
  0xf1   :  { %157 = vsyncpa [#allocation4], 1 }

</bundles_post_ra>
